<compile_context>
chip_gen: v5e
topology: v5e:2x2
jax: 0.10.0
libtpu: 0.0.40
codegen_flags: <defaults>
</compile_context>

<pallas_src>
import math
import numpy as np
import jax
import jax.numpy as jnp
from jax import lax
from jax.experimental import pallas as pl
from jax.experimental.pallas import tpu as pltpu


_SUBLANE = 8
# Target per-grid-step VMEM footprint (streamed blocks + f32 temporaries).
_TILE_FOOTPRINT_BYTES = 24 * 1024 * 1024


def _cdiv(a, b):
    return -(-a // b)


def _round_up(x, m):
    return _cdiv(x, m) * m


def modality_sse(x, csm, ssm, *, stream_dtype=jnp.bfloat16):
    """Per-subject squared Frobenius norm ||X_s - (X_s @ csm) @ ssm_s||_F^2.

    x:   (S, T, V) modality data (any float dtype; cast only if it differs
         from stream_dtype — keep X in stream_dtype to avoid the cast).
    csm: (V, k)    = softmax(C, axis=0)       (precomputed, shared)
    ssm: (S, k, V) = softmax(Sms[m], axis=-2) (precomputed)
    Returns float32 vector of shape (S,).
    """
    S, T, V = x.shape
    k = csm.shape[1]
    stream_bytes = jnp.dtype(stream_dtype).itemsize

    # ---- tile-size selection (VMEM-budget driven, no wrapper-side padding) ----
    # Per T-row cost: double-buffered streamed X row + ~3 f32 temporaries
    # (recon, residual, upcast) + the tiny (row, k) intermediate.
    per_row = V * (2 * stream_bytes + 3 * 4) + k * 4
    tile_rows = max(_SUBLANE,
                    (_TILE_FOOTPRINT_BYTES // per_row) // _SUBLANE * _SUBLANE)
    if S < 2 and T > 2 * _SUBLANE:
        # Keep >= 2 T-tiles so the parallel P split can feed both v7x
        # TensorCores even with a single subject (no-op on v5e/v6e).
        tile_rows = min(tile_rows, _round_up(_cdiv(T, 2), _SUBLANE))

    if T <= tile_rows:
        tT, nT = T, 1                         # full-extent block (always legal)
    else:
        tT = max(_SUBLANE, tile_rows // _SUBLANE * _SUBLANE)
        nT = _cdiv(T, tT)

    P = 2 if (nT >= 2 and nT % 2 == 0) else 1  # parallel split of the T-tile axis
    nTp = nT // P
    needs_mask = (P * nTp * tT != T)           # last tile has out-of-bounds rows

    # ---- one-time dtype alignment (no pad, cast only when needed) ----
    x_s = x if x.dtype == stream_dtype else x.astype(stream_dtype)
    csm_s = csm.astype(stream_dtype)           # tiny, read once
    ssm_s = ssm.astype(stream_dtype)           # read once per subject

    # ---- VMEM budget / limit (double-buffered blocks + f32 temporaries) ----
    x_block = tT * V * stream_bytes
    fixed_blocks = 2 * k * V * stream_bytes + V * 4          # csm + ssm + out
    temps = 3 * tT * V * 4 + 2 * tT * k * 4
    vmem_est = 2 * x_block + 2 * fixed_blocks + temps + (2 << 20)
    vmem_limit = int(min(max(vmem_est + (8 << 20), 32 << 20), 56 << 20))

    def kernel(x_ref, csm_ref, ssm_ref, out_ref):
        t = pl.program_id(2)

        @pl.when(t == 0)
        def _init():
            out_ref[...] = jnp.zeros_like(out_ref)

        x_b = x_ref[0]            # (tT, V)  stream dtype, straight to the MXU
        csm_b = csm_ref[...]      # (V, k)   stream dtype, grid-invariant
        ssm_b = ssm_ref[0]        # (k, V)   stream dtype, per subject

        # A = X @ softmax(C)  (natural layout, f32 accumulation on the MXU)
        a = jnp.dot(x_b, csm_b, preferred_element_type=jnp.float32)     # (tT, k)
        # recon = A @ softmax(Sms); keep MXU operands in the stream dtype.
        recon = jnp.dot(a.astype(ssm_b.dtype), ssm_b,
                        preferred_element_type=jnp.float32)             # (tT, V)
        r = x_b.astype(jnp.float32) - recon                             # fused upcast
        rsq = r * r
        if needs_mask:
            base = (pl.program_id(0) * nTp + t) * tT
            rows = base + lax.broadcasted_iota(jnp.int32, rsq.shape, 0)
            rsq = jnp.where(rows < T, rsq, 0.0)
        # Lane-shaped partial: reduce over rows only; the cross-lane reduce
        # happens once in the wrapper on the tiny (P, S, 1, V) output.
        out_ref[0, 0] = out_ref[0, 0] + jnp.sum(rsq, axis=0, keepdims=True)

    out = pl.pallas_call(
        kernel,
        out_shape=jax.ShapeDtypeStruct((P, S, 1, V), jnp.float32),
        grid_spec=pltpu.PrefetchScalarGridSpec(
            num_scalar_prefetch=0,
            grid=(P, S, nTp),
            in_specs=[
                pl.BlockSpec((1, tT, V), lambda p, s, t: (s, p * nTp + t, 0)),  # X tile
                pl.BlockSpec((V, k), lambda p, s, t: (0, 0)),                   # csm (shared)
                pl.BlockSpec((1, k, V), lambda p, s, t: (s, 0, 0)),             # ssm per subject
            ],
            out_specs=pl.BlockSpec((1, 1, 1, V), lambda p, s, t: (p, s, 0, 0)),
        ),
        compiler_params=pltpu.CompilerParams(
            dimension_semantics=("parallel", "parallel", "arbitrary"),
            vmem_limit_bytes=vmem_limit,
        ),
    )(x_s, csm_s, ssm_s)

    return jnp.sum(out, axis=(0, 2, 3))                                  # (S,)


def mmaa_forward(Xs, C, Sms, loss_robust: bool, *, stream_dtype=jnp.bfloat16):
    """Reproduces MMAA.forward(): returns -mle_loss (scalar, float32).

    bf16 streaming of X/Sms/csm is the default (kernel is HBM-bound); pass
    stream_dtype=jnp.float32 for bit-faithful f32 streaming.  Keep X arrays in
    the stream dtype to avoid a per-call convert of the big modality data.
    """
    Ts = np.array([x.shape[1] for x in Xs])
    eps = 0.001 if loss_robust else 1e-6
    # Hoisted: softmax(C) is shared across modalities, subjects and T tiles.
    csm = jax.nn.softmax(C.astype(jnp.float32), axis=0)                  # (V, k)
    mle_loss = jnp.float32(0.0)
    for m, x in enumerate(Xs):
        ssm = jax.nn.softmax(Sms[m].astype(jnp.float32), axis=-2)        # (S, k, V)
        sse = modality_sse(x, csm, ssm, stream_dtype=stream_dtype)       # (S,)
        if loss_robust:
            beta = 3.0 / 2.0 * eps
            sum_log = jnp.sum(jnp.log(sse + 2.0 * beta))
            max_T = np.max(Ts)
            alpha = 1.0 + max_T / 2.0 - Ts[m] / 2.0
            mle_loss_m = -(2.0 * (alpha + 1.0) + Ts[m]) / 2.0 * sum_log
        else:
            sum_log = jnp.sum(jnp.log(sse + eps))
            mle_loss_m = -Ts[m] / 2.0 * (
                math.log(2.0 * math.pi) + sum_log
                - math.log(float(Ts[m])) + 1.0)
        mle_loss = mle_loss + mle_loss_m
    # TODO(synk): the PyTorch module also appends per-modality losses to a
    # Python dict (self.losses) and runs in float64; both are host-side /
    # precision details with no Pallas equivalent.
    return -mle_loss


def mmaa_reference(Xs, C, Sms, loss_robust: bool):
    """Pure-JAX reference of the PyTorch forward (float32)."""
    Ts = np.array([x.shape[1] for x in Xs])
    eps = 0.001 if loss_robust else 1e-6
    mle_loss = jnp.float32(0.0)
    csm = jax.nn.softmax(C, axis=0)
    for m, x in enumerate(Xs):
        xf = x.astype(jnp.float32)
        A = jnp.einsum("stv,vk->stk", xf, csm)
        ssm = jax.nn.softmax(Sms[m], axis=-2)
        recon = jnp.einsum("stk,skv->stv", A, ssm)
        loss_per_sub = jnp.sum((xf - recon) ** 2, axis=(-2, -1))          # (S,)
        if loss_robust:
            beta = 3.0 / 2.0 * eps
            max_T = np.max(Ts)
            alpha = 1.0 + max_T / 2.0 - Ts[m] / 2.0
            mle_loss_m = -(2.0 * (alpha + 1.0) + Ts[m]) / 2.0 * jnp.sum(
                jnp.log(loss_per_sub + 2.0 * beta))
        else:
            mle_loss_m = -Ts[m] / 2.0 * (
                math.log(2.0 * math.pi)
                + jnp.sum(jnp.log(loss_per_sub + eps))
                - math.log(float(Ts[m])) + 1.0)
        mle_loss = mle_loss + mle_loss_m
    return -mle_loss


if __name__ == "__main__":
    # Small synthetic shapes consistent with the module:
    #   3 modalities (eeg, meg, fmri), S subjects, V voxels, k archetypes,
    #   per-modality time dims T_m.
    S, V, k = 2, 32, 8
    T_per_mod = [16, 16, 8]           # eeg, meg, fmri
    num_mod = len(T_per_mod)

    key = jax.random.PRNGKey(0)
    k_c, k_s, *k_x = jax.random.split(key, 2 + num_mod)

    # Deterministic parameter init mirroring the PyTorch __init__:
    #   C   = softmax(rand(V, k), dim=0)
    #   Sms = softmax(rand(M, S, k, V), dim=-2)
    C = jax.nn.softmax(jax.random.uniform(k_c, (V, k), jnp.float32), axis=0)
    Sms = jax.nn.softmax(
        jax.random.uniform(k_s, (num_mod, S, k, V), jnp.float32), axis=-2)

    # Synthetic modality data X[m] : (S, T_m, V)
    Xs = [jax.random.normal(k_x[m], (S, T_per_mod[m], V), jnp.float32)
          for m in range(num_mod)]

    for loss_robust in (True, False):
        ref = jax.block_until_ready(mmaa_reference(Xs, C, Sms, loss_robust))

        # f32 streaming path: strict check against the reference.
        out_f32 = jax.block_until_ready(
            mmaa_forward(Xs, C, Sms, loss_robust, stream_dtype=jnp.float32))
        np.testing.assert_allclose(np.asarray(out_f32), np.asarray(ref),
                                   rtol=1e-3, atol=1e-3)

        # Default bf16 streaming path: X pre-cast once (as a training loop
        # would) so the kernel reads half the HBM bytes; residuals and
        # accumulation stay f32 inside the kernel.  Relaxed tolerance covers
        # the bf16 quantization of X / Sms / csm.
        Xs_bf16 = [x.astype(jnp.bfloat16) for x in Xs]
        out_bf16 = jax.block_until_ready(
            mmaa_forward(Xs_bf16, C, Sms, loss_robust))
        np.testing.assert_allclose(np.asarray(out_bf16), np.asarray(ref),
                                   rtol=2e-2, atol=2e-2)

    print("KERNEL_OK")
</pallas_src>

<mosaic_0001>
module attributes {stable_mosaic.version = 11 : i64} {
  func.func @kernel(%arg0: i32, %arg1: i32, %arg2: i32, %arg3: memref<1x16x32xf32, #tpu.memory_space<vmem>>, %arg4: memref<32x8xf32, #tpu.memory_space<vmem>>, %arg5: memref<1x8x32xf32, #tpu.memory_space<vmem>>, %arg6: memref<1x1x1x32xf32, #tpu.memory_space<vmem>>) attributes {dimension_semantics = [#tpu.dimension_semantics<parallel>, #tpu.dimension_semantics<parallel>, #tpu.dimension_semantics<arbitrary>], iteration_bounds = array<i64: 1, 2, 1>, scalar_prefetch = 0 : i64, scratch_operands = 0 : i64, tpu.core_type = #tpu.core_type<tc>, window_params = [{transform_indices = @transform_0, window_bounds = array<i64: 1, 16, 32>}, {pipeline_mode = #tpu.pipeline_mode<synchronous>, transform_indices = @transform_1, window_bounds = array<i64: 32, 8>}, {transform_indices = @transform_2, window_bounds = array<i64: 1, 8, 32>}, {transform_indices = @transform_3, window_bounds = array<i64: 1, 1, 1, 32>}]} {
    %c0_i32 = arith.constant 0 : i32
    %0 = arith.cmpi eq, %arg2, %c0_i32 : i32
    %1 = arith.extui %0 : i1 to i32
    %c0_i32_0 = arith.constant 0 : i32
    %2 = arith.cmpi ne, %1, %c0_i32_0 : i32
    scf.if %2 {
      %cst_18 = arith.constant 0.000000e+00 : f32
      %20 = vector.broadcast %cst_18 : f32 to vector<1x1x1x32xf32>
      %c0_19 = arith.constant 0 : index
      %c0_20 = arith.constant 0 : index
      %c0_21 = arith.constant 0 : index
      %c0_22 = arith.constant 0 : index
      %21 = vector.load %arg6[%c0_19, %c0_20, %c0_21, %c0_22] : memref<1x1x1x32xf32, #tpu.memory_space<vmem>>, vector<1x1x1x32xf32>
      tpu.vector_store %arg6[%c0_19, %c0_20, %c0_21, %c0_22], %20 {strides = array<i32>} : memref<1x1x1x32xf32, #tpu.memory_space<vmem>>, vector<1x1x1x32xf32>,
    } else {
    }
    %c0 = arith.constant 0 : index
    %c0_1 = arith.constant 0 : index
    %c0_2 = arith.constant 0 : index
    %3 = vector.load %arg3[%c0, %c0_1, %c0_2] : memref<1x16x32xf32, #tpu.memory_space<vmem>>, vector<1x16x32xf32>
    %4 = vector.shape_cast %3 : vector<1x16x32xf32> to vector<16x32xf32>
    %c0_3 = arith.constant 0 : index
    %c0_4 = arith.constant 0 : index
    %5 = vector.load %arg4[%c0_3, %c0_4] : memref<32x8xf32, #tpu.memory_space<vmem>>, vector<32x8xf32>
    %c0_5 = arith.constant 0 : index
    %c0_6 = arith.constant 0 : index
    %c0_7 = arith.constant 0 : index
    %6 = vector.load %arg5[%c0_5, %c0_6, %c0_7] : memref<1x8x32xf32, #tpu.memory_space<vmem>>, vector<1x8x32xf32>
    %7 = vector.shape_cast %6 : vector<1x8x32xf32> to vector<8x32xf32>
    %cst = arith.constant dense<0.000000e+00> : vector<16x8xf32>
    %8 = tpu.matmul %4, %5, %cst {dimension_numbers = #tpu.dot_dimension_numbers<[1], [0], [0], [1], [0, 0, 1, 1], [], []>} : vector<16x32xf32>, vector<32x8xf32>, vector<16x8xf32> -> vector<16x8xf32>
    %cst_8 = arith.constant dense<0.000000e+00> : vector<16x32xf32>
    %9 = tpu.matmul %8, %7, %cst_8 {dimension_numbers = #tpu.dot_dimension_numbers<[1], [0], [0], [1], [0, 0, 1, 1], [], []>} : vector<16x8xf32>, vector<8x32xf32>, vector<16x32xf32> -> vector<16x32xf32>
    %10 = arith.subf %4, %9 : vector<16x32xf32>
    %11 = arith.mulf %10, %10 : vector<16x32xf32>
    %c0_9 = arith.constant 0 : index
    %c0_10 = arith.constant 0 : index
    %c0_11 = arith.constant 0 : index
    %c0_12 = arith.constant 0 : index
    %12 = vector.load %arg6[%c0_9, %c0_10, %c0_11, %c0_12] : memref<1x1x1x32xf32, #tpu.memory_space<vmem>>, vector<1x1x1x32xf32>
    %13 = vector.shape_cast %12 : vector<1x1x1x32xf32> to vector<1x32xf32>
    %cst_13 = arith.constant dense<0.000000e+00> : vector<32xf32>
    %14 = vector.multi_reduction <add>, %11, %cst_13 [0] : vector<16x32xf32> to vector<32xf32>
    %15 = vector.shape_cast %14 : vector<32xf32> to vector<1x32xf32>
    %16 = arith.addf %13, %15 : vector<1x32xf32>
    %c0_14 = arith.constant 0 : index
    %c0_15 = arith.constant 0 : index
    %c0_16 = arith.constant 0 : index
    %c0_17 = arith.constant 0 : index
    %17 = vector.load %arg6[%c0_14, %c0_15, %c0_16, %c0_17] : memref<1x1x1x32xf32, #tpu.memory_space<vmem>>, vector<1x1x1x32xf32>
    %18 = vector.shape_cast %17 : vector<1x1x1x32xf32> to vector<1x32xf32>
    %19 = vector.shape_cast %16 : vector<1x32xf32> to vector<1x1x1x32xf32>
    tpu.vector_store %arg6[%c0_14, %c0_15, %c0_16, %c0_17], %19 {strides = array<i32>} : memref<1x1x1x32xf32, #tpu.memory_space<vmem>>, vector<1x1x1x32xf32>,
    return
  }
  func.func @transform_0(%arg0: i32, %arg1: i32, %arg2: i32) -> (i32, i32, i32) {
    %c1_i32 = arith.constant 1 : i32
    %0 = arith.muli %arg0, %c1_i32 : i32
    %1 = arith.addi %0, %arg2 : i32
    %c0_i32 = arith.constant 0 : i32
    %c0_i32_0 = arith.constant 0 : i32
    return %arg1, %1, %c0_i32 : i32, i32, i32
  }
  func.func @transform_1(%arg0: i32, %arg1: i32, %arg2: i32) -> (i32, i32) {
    %c0_i32 = arith.constant 0 : i32
    %c0_i32_0 = arith.constant 0 : i32
    %c0_i32_1 = arith.constant 0 : i32
    return %c0_i32, %c0_i32_0 : i32, i32
  }
  func.func @transform_2(%arg0: i32, %arg1: i32, %arg2: i32) -> (i32, i32, i32) {
    %c0_i32 = arith.constant 0 : i32
    %c0_i32_0 = arith.constant 0 : i32
    %c0_i32_1 = arith.constant 0 : i32
    return %arg1, %c0_i32, %c0_i32_0 : i32, i32, i32
  }
  func.func @transform_3(%arg0: i32, %arg1: i32, %arg2: i32) -> (i32, i32, i32, i32) {
    %c0_i32 = arith.constant 0 : i32
    %c0_i32_0 = arith.constant 0 : i32
    %c0_i32_1 = arith.constant 0 : i32
    return %arg0, %arg1, %c0_i32, %c0_i32_0 : i32, i32, i32, i32
  }
}

</mosaic_0001>

<bundles_post_ra>
// kernel: tpu_custom_call.1
= control target key start
LH: loop header
LB: loop body
LE: loop exit
PB: predicated region body
PF: predicated region fallthrough
CT: control target
= control target key end

     0   :  { %8 = vsyncpa [#allocation3], 0  ;;  %s817_s0 = inlined_call_operand.vmem [shape: f32[2,16,32], index: 0, kind: input, shape index: {}]   ;;  %s818_s1 = inlined_call_operand.vmem [shape: f32[32,8], index: 1, kind: input, shape index: {}]   ;;  %s819_s2 = inlined_call_operand.hbm [shape: f32[2,8,32], index: 2, kind: input, shape index: {}]   ;;  %s820_s3 = inlined_call_operand.hbm [shape: f32[1,2,1,32], index: 3, kind: output, shape index: {}]  }
   0x1   :  { %10 = vsyncpa [#allocation3 + $0x1], 0 }
   0x2   :  { %11 = vsyncpa [#allocation4], 0 }
   0x3   :  { %13 = vsyncpa [#allocation4 + $0x1], 0  ;;  %s673_s12 = smov 0   ;;  %s675_s13 = smov 0  }
   0x4   :  { %s677_s14 = smov 0   ;;  %s679_s15 = smov 0  }
   0x5   :  { %s681_s16 = smov 0   ;;  %s683_s17 = smov 0  }
   0x6 LB: > { %s453_s18 = sadd.s32 4294967295, %s650_s17   ;;  %s454_s19 = sadd.s32 4294967294, %s650_s17   ;;  %s650_s17 = sphi %s683_s17, %s19_s17   ;;  %s646_s16 = sphi %s681_s16, %s829_s16   ;;  %s642_s15 = sphi %s679_s15, %s828_s15   ;;  %s638_s14 = sphi %s677_s14, %s827_s14   ;;  %s634_s13 = sphi %s675_s13, %s826_s13   ;;  %s630_s12 = sphi %s673_s12, %s825_s12  }
   0x7   : > { %s34_s20 = sadd.s32 1, %s646_s16  ;;  %s96_s21 = sadd.s32 1, %s638_s14 }
   0x8   : > { %p36_p0 = scmp.ge.s32.totalorder %s34_s20, 2  ;;  %p103_p1 = scmp.ne.s32.totalorder %s638_s14, %s634_s13 }
   0x9   : > { %p104_p2 = scmp.eq.s32.totalorder %s650_s17, 0  ;;  %p109_p3 = scmp.ne.s32.totalorder %s634_s13, %s630_s12 }
   0xa   : > { %s831_s20 = smov (%p36_p0, %s34_s20), 0  ;;  %p110_p5 = scmp.eq.s32.totalorder %s453_s18, 0 }
   0xb   : > { %p714_p4 = por %p104_p2, %p103_p1  ;;  %s93_s23 = ssub.s32 %s646_s16, %s831_s20 }
   0xc   : > { %p135_p6 = scmp.eq.s32.totalorder %s453_s18, 1  ;;  %p94_p7 = scmp.eq.s32.totalorder %s93_s23, 0 }
   0xd   : > { %p720_p8 = por %p110_p5, %p109_p3  ;;  %p141_p10 = scmp.eq.s32.totalorder %s454_s19, 1 }
   0xe   : > { %p724_p9 = por %p135_p6, %p103_p1  ;;  %p456_p12 = scmp.ge.s32.totalorder %s650_s17, 2 }
   0xf   : > { %s729_s26 = scalar_select %p94_p7, %s638_s14, %s96_s21  }
  0x10   : > { %p731_p11 = por %p141_p10, %p109_p3  ;;  %p487_p13 = scmp.lt.s32.totalorder %s650_s17, 2 }
  0x11   : > { %s179_s28 = sand.u32 1, %s638_s14   ;;  %s458_s30 = sshll.u32 %s646_s16, 3 }
  0x12   : > { %s457_s29 = sshll.u32 %s179_s28, 3  ;;  %s187_s6 = scalar_lea.hbm %s819_s2, %s458_s30 }
  0x13   : > { %s183_s7 = scalar_lea.vmem [#allocation2], %s457_s29  ;;  %s189_s9 = sshll.u32 %s187_s6, 4  ;;  %s190_s9 = int_to_ptr.hbm [resolvable:$true] %s189_s9 }
  0x14   : > { %s191_s8 = sshll.u32 %s183_s7, 4  ;;  %p480_p0 = pnand %p487_p13, %p714_p4  ;;  %s192_s8 = int_to_ptr.vmem [resolvable:$true] %s191_s8 }
  0x15   : > { %p459_p1 = scmp.ge.s32.totalorder %s650_s17, 1  ;;  %p196_p2 = scmp.lt.s32.totalorder %s650_s17, 3 }
  0x16   : > { %s180_s10 = scalar_lea.sflag [#allocation3], %s179_s28 }
  0x17   : > { %482 = dma.hbm_to_vmem [thread:$0]  (!%p480_p0), %s190_s9, 128, %s192_s8, %s180_s10  }
  0x18   : > { %p197_p3 = pnand %p459_p1, %p196_p2 }
  0x19   : > { %s747_s11 = sand.u32 (!%p197_p3), 1, %s634_s13  }
  0x1a   : > { %200 = sbr.rel (%p197_p3) target bundleno = 328 (0x148), region = 32  ;;  %s460_s18 = sshll.u32 (!%p197_p3), %s747_s11, 3 }
  0x1b   : > { %s203_s19 = scalar_lea.sflag (!%p197_p3), [#allocation3], %s747_s11  ;;  %s206_s21 = scalar_lea.vmem (!%p197_p3), [#allocation2], %s460_s18 }
  0x1f   : > { %621 = dma.done.wait (%p720_p8), %s203_s19, 128  }
  0x20   : > { %623 = vsyncadd (%p720_p8), %s203_s19, 4294967168  ;;  %p241_p4 = scmp.lt.s32.totalorder %s642_s15, 1  ;;  %v262_v0 = vld [vmem:[%s818_s1 + $0x18] sm:$0xff]  ;;  %v261_v1 = vld [vmem:[%s818_s1 + $0x10] sm:$0xff]  ;;  %vm264_vm0 = vcmask 261120   ;;  %vm294_vm1 = vcmask 64512  }
  0x21   : > { %470 = vmatpush.msra.mxu2 %v262_v0  ;;  %283 = vmatpush.msra.mxu0 %v262_v0  ;;  %v260_v2 = vld [vmem:[%s818_s1 + $0x8] sm:$0xff]  ;;  %v259_v3 = vld [vmem:[%s818_s1] sm:$0xff]  ;;  %vm255_vm2 = vcmask 253952   ;;  %s238_s18 = scalar_lea.vmem [#allocation5], %s747_s11  ;;  %v652_v9 = vmov 0.0   ;;  %s342_s29 = scalar_lea.sflag [#allocation4], %s747_s11 }
  0x22   : > { %s242_s22 = scalar_select %p241_p4, %s642_s15, 1  ;;  %v263_v6 = vld [vmem:[%s206_s21] sm:$0xff]  ;;  %256 = vst.msk [vmem:[%s238_s18] sm:$0x1] %vm255_vm2, %v652_v9 }
  0x23   : > { %471 = vmatpush.msra.mxu2 %v261_v1  ;;  %284 = vmatpush.msra.mxu0 %v261_v1  ;;  %s588_s6 = scalar_lea.hbm %s820_s3, 2 }
  0x24   : > { %s469_s23 = sshll.u32 %s242_s22, 4  ;;  %474 = vmatpush.msra.mxu3 %v263_v6  ;;  %316 = vmatpush.msra.mxu1 %v263_v6  ;;  %s352_s22 = scalar_lea.hbm %s820_s3, %s642_s15 }
  0x25   : > { %s248_s8 = scalar_lea.vmem %s817_s0, %s469_s23  ;;  %472 = vmatpush.msra.mxu2 %v260_v2  ;;  %285 = vmatpush.msra.mxu0 %v260_v2  ;;  %s354_s23 = sshll.u32 %s238_s18, 4  ;;  %s355_s23 = int_to_ptr.vmem [resolvable:$true] %s354_s23 }
  0x26   : > { %v258_v4 = vld [vmem:[%s248_s8 + $0x8] sm:$0xff]  ;;  %v257_v5 = vld [vmem:[%s248_s8] sm:$0xff]  ;;  %s356_s28 = sshll.u32 %s352_s22, 4  ;;  %s357_s28 = int_to_ptr.hbm [resolvable:$true] %s356_s28 }
  0x27   : > { %473 = vmatpush.msra.mxu2 %v259_v3  ;;  %286 = vmatpush.msra.mxu0 %v259_v3  ;;  %s582_s30 = sshra.s32 %s357_s28, 4  ;;  %s583_s30 = int_to_ptr.hbm [resolvable:$true] %s582_s30 }
  0x28   : > { %464 = vmatmul.msk.f32.vlgmr.msra.gmra.mxu2 %vm264_vm0, %v258_v4  ;;  %463 = vmatmul.msk.f32.vlgmr.msra.gmra.mxu0 %vm264_vm0, %v257_v5  ;;  %s584_s4 = scalar_lea.hbm %s583_s30, 1  ;;  %p589_p8 = scmp.lt.s32.totalorder %s583_s30, %s820_s3 }
  0x29   : > { %v328_v24 = vld [vmem:[%s238_s18] sm:$0x1]  ;;  %p585_p5 = scmp.ne.s32.totalorder %s583_s30, %s584_s4  ;;  %p590_p10 = scmp.lt.s32.totalorder %s588_s6, %s584_s4 }
  0x2b   : > { %p586_p6 = pnand %p585_p5, %p724_p9  ;;  %p591_p13 = por %p590_p10, %p589_p8 }
  0x2d   : > { %p587_p7 = pneg %p586_p6 }
  0x2f   : > { %p592_p0 = pnand %p591_p13, %p587_p7 }
  0xa5   : > { %v288_v7 = vpop.f32.mrf.mxu0 }
  0xa6   : > { %465 = vmatmul.msk.f32.vlgmr.msra.gmra.mxu1 %vm294_vm1, %v288_v7 }
  0xab   : > { %v291_v8 = vpop.f32.mrf.mxu2 }
  0xac   : > { %466 = vmatmul.msk.f32.vlgmr.msra.gmra.mxu3 %vm294_vm1, %v291_v8 }
 0x123   : > { %v318_v10 = vpop.f32.mrf.mxu1 }
 0x124   : > { %v324_v11 = vsub.f32 %v257_v5, %v318_v10 }
 0x126   : > { %v326_v12 = vmul.f32 %v324_v11, %v324_v11 }
 0x128   : > { %v329_v15 = vsel %vm264_vm0, %v326_v12, 0.0 }
 0x12f   : > { %v321_v13 = vpop.f32.mrf.mxu3 }
 0x130   : > { %v325_v14 = vsub.f32 %v258_v4, %v321_v13 }
 0x132   : > { %v327_v16 = vmul.f32 %v325_v14, %v325_v14 }
 0x134   : > { %v330_v17 = vsel %vm264_vm0, %v327_v16, 0.0 }
 0x135   : > { %v331_v18 = vadd.f32 %v330_v17, %v329_v15 }
 0x137   : > { %v332_v19 = vrot.slane %v331_v18, 4 }
 0x139   : > { %v333_v20 = vadd.f32 %v332_v19, %v331_v18 }
 0x13b   : > { %v334_v21 = vrot.slane %v333_v20, 2 }
 0x13d   : > { %v335_v22 = vadd.f32 %v334_v21, %v333_v20 }
 0x13f   : > { %v336_v23 = vrot.slane %v335_v22, 1 }
 0x141   : > { %v337_v25 = vadd.f32 %v336_v23, %v335_v22 }
 0x143   : > { %v338_v26 = vadd.f32 %v337_v25, %v328_v24 }
 0x145   : > { %340 = vst.msk [vmem:[%s238_s18] sm:$0x1] %vm255_vm2, %v338_v26 }
 0x146   : > { %595 = shalt.err (!%p592_p0)
}
 0x147   : > { %477 = dma.vmem_to_hbm [thread:$0]  (%p724_p9), %s355_s23, 16, %s357_s28, %s342_s29  }
 0x148 PF: > { %s368_s11 = sand.u32 1, %s630_s12   ;;  %p484_p1 = pnand %p456_p12, %p731_p11 }
 0x149   : > { %s369_s8 = scalar_lea.sflag [#allocation4], %s368_s11 }
 0x14a   : > { %p485_p2 = pneg %p484_p1 }
 0x14c   : > { %625 = dma.done.wait (%p485_p2), %s369_s8, 16  }
 0x14d   : > { %627 = vsyncadd (%p485_p2), %s369_s8, 4294967280  ;;  %s19_s17 = sadd.s32 1, %s650_s17   ;;  %s825_s12 = smov %s634_s13 }
 0x14e   : > { %p16_p3 = scmp.ge.s32.totalorder %s19_s17, 4   ;;  %s826_s13 = smov %s638_s14 }
 0x14f   : > { %s827_s14 = smov %s729_s26  ;;  %s828_s15 = smov %s646_s16 }
 0x150   : > { %s829_s16 = smov %s831_s20  ;;  %18 = sbr.rel (!%p16_p3) target bundleno = 6 (0x6), region = 84 }
 0x155   :  { %374 = vsyncpa [#allocation3], 1 }
 0x156   :  { %376 = vsyncpa [#allocation3 + $0x1], 1 }
 0x157   :  { %377 = vsyncpa [#allocation4], 1 }
 0x158   :  { %379 = vsyncpa [#allocation4 + $0x1], 1 }

</bundles_post_ra>
